<compile_context>
chip_gen: v5e
topology: v5e:2x2
jax: 0.10.0
libtpu: 0.0.40
codegen_flags: <defaults>
</compile_context>

<pallas_src>
import functools

import jax
import jax.numpy as jnp
from jax import lax
from jax.experimental import pallas as pl
from jax.experimental.pallas import tpu as pltpu


SMALL_BATCH_MAX = 128          # single-dispatch, grid-less path
TB_MAX = 4096                  # rows per streamed grid block
ROW_CHUNK = 128                # rows per in-kernel chunk (bounds vreg pressure)
MIN_ROWS_FOR_TWO_BLOCKS = 2048  # force >=2 grid blocks (v7x dual-TC) above this


def _mlp(x, w1t, b1, w2t, b2, w3t, b3):
    """x: [R, 2] f32; weights in [in, out] layout; biases [1, out]. Returns [R, A]."""
    # Layer 1 (K=2): two VPU broadcast FMAs instead of a heavily padded MXU pass.
    h1 = x[:, 0:1] * w1t[0:1, :] + x[:, 1:2] * w1t[1:2, :] + b1      # [R, 24]
    h1 = jnp.maximum(h1, 0.0)
    # Layer 2 (24x24) on the MXU, f32 accumulation.
    h2 = jnp.dot(h1, w2t, preferred_element_type=jnp.float32) + b2   # [R, 24]
    h2 = jnp.maximum(h2, 0.0)
    # Output layer (24 x A) on the MXU.
    return jnp.dot(h2, w3t, preferred_element_type=jnp.float32) + b3  # [R, A]


def _critic_small_kernel(x_ref, w1_ref, b1_ref, w2_ref, b2_ref, w3_ref, b3_ref,
                         o_ref):
    # Whole problem resident in VMEM; one shot.
    o_ref[...] = _mlp(x_ref[...], w1_ref[...], b1_ref[...], w2_ref[...],
                      b2_ref[...], w3_ref[...], b3_ref[...]).astype(o_ref.dtype)


def _critic_tiled_kernel(x_ref, w1_ref, b1_ref, w2_ref, b2_ref, w3_ref, b3_ref,
                         o_ref, *, row_chunk):
    # x_ref: [TB, 2], o_ref: [TB, A]; weights/biases VMEM-resident.
    w1t = w1_ref[...]
    b1 = b1_ref[...]
    w2t = w2_ref[...]
    b2 = b2_ref[...]
    w3t = w3_ref[...]
    b3 = b3_ref[...]

    n_chunks = x_ref.shape[0] // row_chunk   # static

    def body(j, carry):
        r = pl.multiple_of(j * row_chunk, row_chunk)
        x = x_ref[pl.ds(r, row_chunk), :]                       # [row_chunk, 2]
        out = _mlp(x, w1t, b1, w2t, b2, w3t, b3)                # [row_chunk, A]
        o_ref[pl.ds(r, row_chunk), :] = out.astype(o_ref.dtype)
        return carry

    lax.fori_loop(0, n_chunks, body, 0, unroll=True)


def prepare_params(params):
    """One-time conversion from PyTorch layout ([out,in] weights, [out] biases)
    to the kernel layout ([in,out] weights, [1,out] biases). Amortized across
    all forward calls."""
    return {
        "w1t": jnp.asarray(params["w1"], jnp.float32).T,          # [2, 24]
        "b1r": jnp.asarray(params["b1"], jnp.float32).reshape(1, -1),
        "w2t": jnp.asarray(params["w2"], jnp.float32).T,          # [24, 24]
        "b2r": jnp.asarray(params["b2"], jnp.float32).reshape(1, -1),
        "w3t": jnp.asarray(params["w3"], jnp.float32).T,          # [24, A]
        "b3r": jnp.asarray(params["b3"], jnp.float32).reshape(1, -1),
    }


@jax.jit
def critic_forward(x, kparams):
    """x: [B, 2]. kparams: output of prepare_params. Returns [B, A] float32."""
    w1t, b1 = kparams["w1t"], kparams["b1r"]
    w2t, b2 = kparams["w2t"], kparams["b2r"]
    w3t, b3 = kparams["w3t"], kparams["b3r"]

    x = x.astype(jnp.float32)
    B = x.shape[0]
    A = w3t.shape[1]

    flops_per_row = 2 * (2 * 24 + 24 * 24 + 24 * A)
    param_bytes = 4 * (24 * 2 + 24 + 24 * 24 + 24 + A * 24 + A)

    # ---------- small-batch path: one dispatch, no pad/slice/transpose ----------
    if B <= SMALL_BATCH_MAX:
        return pl.pallas_call(
            _critic_small_kernel,
            out_shape=jax.ShapeDtypeStruct((B, A), jnp.float32),
            cost_estimate=pl.CostEstimate(
                flops=flops_per_row * B, transcendentals=0,
                bytes_accessed=4 * B * (2 + A) + param_bytes),
        )(x, w1t, b1, w2t, b2, w3t, b3)

    # ---------- tiled path: large streamed blocks, in-kernel row chunking ----------
    # Pad only up to a multiple of ROW_CHUNK (128), not up to the block size.
    rows128 = pl.cdiv(B, ROW_CHUNK) * ROW_CHUNK
    nb = pl.cdiv(rows128, TB_MAX)
    if nb == 1 and rows128 >= MIN_ROWS_FOR_TWO_BLOCKS:
        nb = 2                        # give v7x's second TensorCore a block
    if nb > 1 and nb % 2 == 1:
        nb += 1                       # even block count shards evenly across 2 TCs
    TB = pl.cdiv(rows128 // ROW_CHUNK, nb) * ROW_CHUNK
    B_pad = nb * TB                   # waste per extra block < 128 rows

    x_p = jnp.pad(x, ((0, B_pad - B), (0, 0))) if B_pad != B else x

    resident = lambda i: (0, 0)       # weights/biases stay in VMEM across the grid
    grid_spec = pltpu.PrefetchScalarGridSpec(
        num_scalar_prefetch=0,
        grid=(nb,),
        in_specs=[
            pl.BlockSpec((TB, 2), lambda i: (i, 0)),   # x tile (streamed)
            pl.BlockSpec((2, 24), resident),           # w1^T
            pl.BlockSpec((1, 24), resident),           # b1
            pl.BlockSpec((24, 24), resident),          # w2^T
            pl.BlockSpec((1, 24), resident),           # b2
            pl.BlockSpec((24, A), resident),           # w3^T
            pl.BlockSpec((1, A), resident),            # b3
        ],
        out_specs=pl.BlockSpec((TB, A), lambda i: (i, 0)),
    )

    out = pl.pallas_call(
        functools.partial(_critic_tiled_kernel, row_chunk=ROW_CHUNK),
        out_shape=jax.ShapeDtypeStruct((B_pad, A), jnp.float32),
        grid_spec=grid_spec,
        compiler_params=pltpu.CompilerParams(
            dimension_semantics=("parallel",)),
        cost_estimate=pl.CostEstimate(
            flops=flops_per_row * B_pad, transcendentals=0,
            bytes_accessed=4 * B_pad * (2 + A) + param_bytes),
    )(x_p, w1t, b1, w2t, b2, w3t, b3)

    return out[:B] if B_pad != B else out


def init_params(key, actions):
    """Deterministic init matching nn.Linear shapes (PyTorch [out, in] weights,
    [out] biases)."""
    k1, k2, k3, k4, k5, k6 = jax.random.split(key, 6)

    def uniform(k, shape, fan_in):
        bound = 1.0 / jnp.sqrt(fan_in)
        return jax.random.uniform(k, shape, jnp.float32, -bound, bound)

    return {
        "w1": uniform(k1, (24, 2), 2.0),
        "b1": uniform(k2, (24,), 2.0),
        "w2": uniform(k3, (24, 24), 24.0),
        "b2": uniform(k4, (24,), 24.0),
        "w3": uniform(k5, (actions, 24), 24.0),
        "b3": uniform(k6, (actions,), 24.0),
    }


def critic_ref(x, params):
    h1 = jnp.maximum(x @ params["w1"].T + params["b1"], 0.0)
    h2 = jnp.maximum(h1 @ params["w2"].T + params["b2"], 0.0)
    return h2 @ params["w3"].T + params["b3"]


if __name__ == "__main__":
    key = jax.random.PRNGKey(0)
    k_params, k_x, k_x2, k_x3 = jax.random.split(key, 4)

    actions = 4
    params = init_params(k_params, actions)
    kparams = prepare_params(params)

    # Small batch (per-step RL usage): grid-less single-dispatch path.
    x = jax.random.normal(k_x, (8, 2), dtype=jnp.float32)
    out = jax.block_until_ready(critic_forward(x, kparams))
    ref = critic_ref(x, params)
    assert out.shape == (8, actions)
    assert jnp.allclose(out, ref, atol=1e-5, rtol=1e-5)

    # Non-multiple-of-128 batch: tiled path with adaptive (<=127-row) padding.
    x2 = jax.random.normal(k_x2, (300, 2), dtype=jnp.float32)
    out2 = jax.block_until_ready(critic_forward(x2, kparams))
    ref2 = critic_ref(x2, params)
    assert out2.shape == (300, actions)
    assert jnp.allclose(out2, ref2, atol=1e-5, rtol=1e-5)

    # Larger batch: multi-block grid (exercises the "parallel" batch sharding).
    x3 = jax.random.normal(k_x3, (2560, 2), dtype=jnp.float32)
    out3 = jax.block_until_ready(critic_forward(x3, kparams))
    ref3 = critic_ref(x3, params)
    assert out3.shape == (2560, actions)
    assert jnp.allclose(out3, ref3, atol=1e-5, rtol=1e-5)

    print("KERNEL_OK")
</pallas_src>

<mosaic_0001>
module attributes {stable_mosaic.version = 11 : i64} {
  func.func @_critic_small_kernel(%arg0: memref<8x2xf32, #tpu.memory_space<vmem>>, %arg1: memref<2x24xf32, #tpu.memory_space<vmem>>, %arg2: memref<1x24xf32, #tpu.memory_space<vmem>>, %arg3: memref<24x24xf32, #tpu.memory_space<vmem>>, %arg4: memref<1x24xf32, #tpu.memory_space<vmem>>, %arg5: memref<24x4xf32, #tpu.memory_space<vmem>>, %arg6: memref<1x4xf32, #tpu.memory_space<vmem>>, %arg7: memref<8x4xf32, #tpu.memory_space<vmem>>) attributes {dimension_semantics = [], scalar_prefetch = 0 : i64, scratch_operands = 0 : i64, tpu.core_type = #tpu.core_type<tc>} {
    %c0 = arith.constant 0 : index
    %c0_0 = arith.constant 0 : index
    %0 = vector.load %arg0[%c0, %c0_0] : memref<8x2xf32, #tpu.memory_space<vmem>>, vector<8x2xf32>
    %c0_1 = arith.constant 0 : index
    %c0_2 = arith.constant 0 : index
    %1 = vector.load %arg1[%c0_1, %c0_2] : memref<2x24xf32, #tpu.memory_space<vmem>>, vector<2x24xf32>
    %c0_3 = arith.constant 0 : index
    %c0_4 = arith.constant 0 : index
    %2 = vector.load %arg2[%c0_3, %c0_4] : memref<1x24xf32, #tpu.memory_space<vmem>>, vector<1x24xf32>
    %c0_5 = arith.constant 0 : index
    %c0_6 = arith.constant 0 : index
    %3 = vector.load %arg3[%c0_5, %c0_6] : memref<24x24xf32, #tpu.memory_space<vmem>>, vector<24x24xf32>
    %c0_7 = arith.constant 0 : index
    %c0_8 = arith.constant 0 : index
    %4 = vector.load %arg4[%c0_7, %c0_8] : memref<1x24xf32, #tpu.memory_space<vmem>>, vector<1x24xf32>
    %c0_9 = arith.constant 0 : index
    %c0_10 = arith.constant 0 : index
    %5 = vector.load %arg5[%c0_9, %c0_10] : memref<24x4xf32, #tpu.memory_space<vmem>>, vector<24x4xf32>
    %c0_11 = arith.constant 0 : index
    %c0_12 = arith.constant 0 : index
    %6 = vector.load %arg6[%c0_11, %c0_12] : memref<1x4xf32, #tpu.memory_space<vmem>>, vector<1x4xf32>
    %7 = vector.extract_strided_slice %0 {offsets = [0, 0], sizes = [8, 1], strides = [1, 1]} : vector<8x2xf32> to vector<8x1xf32>
    %8 = vector.extract_strided_slice %1 {offsets = [0, 0], sizes = [1, 24], strides = [1, 1]} : vector<2x24xf32> to vector<1x24xf32>
    %9 = vector.broadcast %7 : vector<8x1xf32> to vector<8x24xf32>
    %10 = vector.broadcast %8 : vector<1x24xf32> to vector<8x24xf32>
    %11 = arith.mulf %9, %10 : vector<8x24xf32>
    %12 = vector.extract_strided_slice %0 {offsets = [0, 1], sizes = [8, 1], strides = [1, 1]} : vector<8x2xf32> to vector<8x1xf32>
    %13 = vector.extract_strided_slice %1 {offsets = [1, 0], sizes = [1, 24], strides = [1, 1]} : vector<2x24xf32> to vector<1x24xf32>
    %14 = vector.broadcast %12 : vector<8x1xf32> to vector<8x24xf32>
    %15 = vector.broadcast %13 : vector<1x24xf32> to vector<8x24xf32>
    %16 = arith.mulf %14, %15 : vector<8x24xf32>
    %17 = arith.addf %11, %16 : vector<8x24xf32>
    %18 = vector.broadcast %2 : vector<1x24xf32> to vector<8x24xf32>
    %19 = arith.addf %17, %18 : vector<8x24xf32>
    %cst = arith.constant 0.000000e+00 : f32
    %20 = vector.broadcast %cst : f32 to vector<8x24xf32>
    %21 = arith.maximumf %19, %20 : vector<8x24xf32>
    %cst_13 = arith.constant dense<0.000000e+00> : vector<8x24xf32>
    %22 = tpu.matmul %21, %3, %cst_13 {dimension_numbers = #tpu.dot_dimension_numbers<[1], [0], [0], [1], [0, 0, 1, 1], [], []>} : vector<8x24xf32>, vector<24x24xf32>, vector<8x24xf32> -> vector<8x24xf32>
    %23 = vector.broadcast %4 : vector<1x24xf32> to vector<8x24xf32>
    %24 = arith.addf %22, %23 : vector<8x24xf32>
    %cst_14 = arith.constant 0.000000e+00 : f32
    %25 = vector.broadcast %cst_14 : f32 to vector<8x24xf32>
    %26 = arith.maximumf %24, %25 : vector<8x24xf32>
    %cst_15 = arith.constant dense<0.000000e+00> : vector<8x4xf32>
    %27 = tpu.matmul %26, %5, %cst_15 {dimension_numbers = #tpu.dot_dimension_numbers<[1], [0], [0], [1], [0, 0, 1, 1], [], []>} : vector<8x24xf32>, vector<24x4xf32>, vector<8x4xf32> -> vector<8x4xf32>
    %28 = vector.broadcast %6 : vector<1x4xf32> to vector<8x4xf32>
    %29 = arith.addf %27, %28 : vector<8x4xf32>
    %c0_16 = arith.constant 0 : index
    %c0_17 = arith.constant 0 : index
    %30 = vector.load %arg7[%c0_16, %c0_17] : memref<8x4xf32, #tpu.memory_space<vmem>>, vector<8x4xf32>
    tpu.vector_store %arg7[%c0_16, %c0_17], %29 {strides = array<i32>} : memref<8x4xf32, #tpu.memory_space<vmem>>, vector<8x4xf32>,
    return
  }
}

</mosaic_0001>

<bundles_post_ra>
// kernel: critic_forward.1
= control target key start
LH: loop header
LB: loop body
LE: loop exit
PB: predicated region body
PF: predicated region fallthrough
CT: control target
= control target key end

     0   :  { %v125_v0 = vmov 0   ;;  %v126_v2 = vmov 1   ;;  %vm59_vm0 = vcmask 195584   ;;  %vm110_vm1 = vcmask 31744   ;;  %s203_s0 = inlined_call_operand.vmem [shape: f32[8,2], index: 0, kind: input, shape index: {}]   ;;  %s204_s2 = inlined_call_operand.vmem [shape: f32[1,24], index: 2, kind: input, shape index: {}]   ;;  %s205_s4 = inlined_call_operand.vmem [shape: f32[1,24], index: 4, kind: input, shape index: {}]   ;;  %s206_s3 = inlined_call_operand.vmem [shape: f32[24,24], index: 3, kind: input, shape index: {}]   ;;  %s207_s1 = inlined_call_operand.vmem [shape: f32[2,24], index: 1, kind: input, shape index: {}]   ;;  %s208_s6 = inlined_call_operand.vmem [shape: f32[1,4], index: 6, kind: input, shape index: {}]   ;;  %s209_s5 = inlined_call_operand.vmem [shape: f32[24,4], index: 5, kind: input, shape index: {}]   ;;  %s210_s7 = inlined_call_operand.vmem [shape: f32[8,4], index: 7, kind: output, shape index: {}]  }
   0x1   :  { %120 = vset.pattern.permute.xlu0 %v125_v0  ;;  %v26_v1 = vld [vmem:[%s203_s0] sm:$0xff]  ;;  %v31_v3 = vld [vmem:[%s206_s3 + $0x10] sm:$0xff]  ;;  %v30_v4 = vld [vmem:[%s206_s3 + $0x8] sm:$0xff] }
   0x2   :  { %39 = vperm.xlu0 %120, %v26_v1   ;;  %76 = vmatpush.msra.mxu0 %v31_v3  ;;  %v29_v5 = vld [vmem:[%s206_s3] sm:$0xff]  ;;  %v35_v17 = vld [vmem:[%s209_s5 + $0x10] sm:$0xff]  ;;  %v34_v18 = vld [vmem:[%s209_s5 + $0x8] sm:$0xff] }
   0x3   :  { %v27_v7 = vld [vmem:[%s207_s1] sm:$0x3]  ;;  %103 = vmatpush.msra.mxu1 %v35_v17 }
   0x4   :  { %77 = vmatpush.msra.mxu0 %v30_v4  ;;  %v42_v8 = vperm.slane %v27_v7, 0  ;;  %v48_v9 = vperm.slane %v27_v7, 1  ;;  %v122_v13 = vld [vmem:[%s204_s2] ss:$0 sm:$0xff] }
   0x5   :  { %104 = vmatpush.msra.mxu1 %v34_v18  ;;  %v33_v19 = vld [vmem:[%s209_s5] sm:$0xff] }
   0x6   :  { %78 = vmatpush.msra.mxu0 %v29_v5  ;;  %v123_v20 = vld [vmem:[%s205_s4] ss:$0 sm:$0xff] }
   0x7   :  { %105 = vmatpush.msra.mxu1 %v33_v19  ;;  %v124_v24 = vld [vmem:[%s208_s6] ss:$0 sm:$0xff] }
   0xa   :  { %121 = vset.pattern.permute.xlu0 %v126_v2 }
   0xb   :  { %45 = vperm.xlu0 %121, %v26_v1  }
  0x74   :  { %v40_v6 = vpop.permute.xlu0 %39 }
  0x75   :  { %v43_v11 = vmul.f32 %v42_v8, %v40_v6 }
  0x7d   :  { %v46_v10 = vpop.permute.xlu0 %45 }
  0x7e   :  { %v49_v12 = vmul.f32 %v48_v9, %v46_v10 }
  0x80   :  { %v50_v14 = vadd.f32 %v49_v12, %v43_v11 }
  0x82   :  { %v54_v15 = vadd.f32 %v122_v13, %v50_v14 }
  0x84   :  { %v55_v16 = vmax.f32 %v54_v15, 0.0 }
  0x86   :  { %116 = vmatmul.msk.f32.vlgmr.msra.gmra.mxu0 %vm59_vm0, %v55_v16 }
 0x103   :  { %v80_v21 = vpop.f32.mrf.mxu0 }
 0x104   :  { %v81_v22 = vadd.f32 %v123_v20, %v80_v21 }
 0x106   :  { %v83_v23 = vmax.f32 %v81_v22, 0.0 }
 0x108   :  { %117 = vmatmul.msk.f32.vlgmr.msra.gmra.mxu1 %vm59_vm0, %v83_v23 }
 0x185   :  { %v107_v25 = vpop.f32.mrf.mxu1 }
 0x186   :  { %v108_v26 = vadd.f32 %v124_v24, %v107_v25 }
 0x188   :  { %111 = vst.msk [vmem:[%s210_s7] sm:$0xff] %vm110_vm1, %v108_v26 }

</bundles_post_ra>
